<compile_context>
chip_gen: v7x
topology: tpu7x:2x2x1
jax: 0.10.0
libtpu: 0.0.40
codegen_flags: <defaults>
</compile_context>

<pallas_src>
import jax
import jax.numpy as jnp
from jax.experimental import pallas as pl
from jax.experimental.pallas import tpu as pltpu

LANE = 128
SUBLANE = 8


def _round_up(x, m):
    return (x + m - 1) // m * m


def sequential_kernel(x_ref, w1_ref, b1_ref, w2_ref, b2_ref, o_ref):
    # layer 0: Linear(Din -> H)   (MXU, f32 accumulate)
    h = jnp.dot(x_ref[...], w1_ref[...], preferred_element_type=jnp.float32)
    # layer 1: bias + Tanh in f32 (VPU + EUP)
    h = jnp.tanh(h + b1_ref[...])
    # feed the second matmul in the weights' dtype (bf16 by default)
    h = h.astype(w2_ref.dtype)
    # layer 2: Linear(H -> Dout)
    y = jnp.dot(h, w2_ref[...], preferred_element_type=jnp.float32)
    # layer 3: bias + Tanh
    o_ref[...] = jnp.tanh(y + b2_ref[...]).astype(o_ref.dtype)


def prepare_params(w1, b1, w2, b2, *, mxu_dtype=jnp.bfloat16):
    """Pad weights/biases to lane-dense (128-multiple) shapes and cast the MXU
    operands.  Call ONCE per parameter update; the result is reused by every
    forward call so the pad/cast never shows up in the per-step graph.

    The padding is exact for this Linear+Tanh chain: padded input columns see
    zero weights, padded hidden columns carry tanh(0 + 0) = 0 into zero rows
    of W2, and padded output columns are sliced off by the wrapper.
    """
    Din, H = w1.shape
    H_w, Dout = w2.shape
    assert H == H_w
    cdt = jnp.dtype(mxu_dtype)

    Din_p = _round_up(Din, LANE)
    H_p = _round_up(H, LANE)
    Dout_p = _round_up(Dout, LANE)
    # NOTE(v6e/v7x): if H/Dout were tunable, choosing them as multiples of 256
    # would fill the 256x256 MXU; here they are fixed by the module, so we
    # keep the minimal 128-lane padding (least DMA traffic).

    w1_p = jnp.zeros((Din_p, H_p), cdt).at[:Din, :H].set(w1.astype(cdt))
    w2_p = jnp.zeros((H_p, Dout_p), cdt).at[:H, :Dout].set(w2.astype(cdt))
    b1_p = jnp.zeros((1, H_p), jnp.float32).at[:, :H].set(
        b1.astype(jnp.float32).reshape(1, H))
    b2_p = jnp.zeros((1, Dout_p), jnp.float32).at[:, :Dout].set(
        b2.astype(jnp.float32).reshape(1, Dout))

    return {
        "w1": w1_p, "b1": b1_p, "w2": w2_p, "b2": b2_p,
        "dims": (Din, H, Dout), "mxu_dtype": cdt,
    }


def sequential_forward(x, params, *, tile_b=None, out_dtype=None):
    """Fused Sequential([Linear, Tanh, Linear, Tanh]) forward.

    x:      [B, Din]
    params: output of prepare_params()
    out_dtype: optional output dtype (e.g. jnp.bfloat16 to halve the store
               stream); tanh is always computed in f32 and cast at the store.
    """
    w1_p, b1_p, w2_p, b2_p = params["w1"], params["b1"], params["w2"], params["b2"]
    Din, H, Dout = params["dims"]
    cdt = params["mxu_dtype"]

    B, Din_in = x.shape
    assert Din_in == Din
    Din_p, H_p = w1_p.shape
    _, Dout_p = w2_p.shape
    out_dtype = jnp.dtype(out_dtype) if out_dtype is not None else x.dtype

    # bf16 packs 2 rows per sublane -> row tiles are multiples of 16 (8 f32).
    sub = SUBLANE * (4 // max(1, cdt.itemsize))

    # Row-tile heuristic: aim for >= 8 grid steps (so v7x gets ~4 per core and
    # double-buffering has work to overlap) while letting tiles grow to 512
    # rows for large B to amortize the ~0.35 us/step overhead and the MXU
    # weight pushes.
    if tile_b is None:
        tile_b = min(512, max(sub, _round_up(pl.cdiv(B, 8), sub)))
    tile_b = min(512, max(sub, _round_up(tile_b, sub)))

    # Pad rows to a multiple of 2*tile_b: grid_b is even, so the "parallel"
    # batch axis splits evenly across v7x's two TensorCores.
    B_p = _round_up(B, 2 * tile_b)
    grid_b = B_p // tile_b

    # Activations: pass through unmodified when already lane/tile aligned
    # (skips an extra HBM read+write of the x stream); otherwise zero-pad.
    # NOTE: padded rows compute tanh(tanh(b1) @ W2 + b2) garbage that is
    # sliced off below -- never consume out_p without the [:B, :Dout] slice.
    if B_p == B and Din_p == Din:
        x_p = x if x.dtype == cdt else x.astype(cdt)
    else:
        x_p = jnp.zeros((B_p, Din_p), cdt).at[:B, :Din].set(x.astype(cdt))

    in_item = cdt.itemsize
    out_item = out_dtype.itemsize
    cost = pl.CostEstimate(
        flops=2 * B_p * (Din_p * H_p + H_p * Dout_p),
        transcendentals=B_p * (H_p + Dout_p),
        bytes_accessed=(B_p * Din_p * in_item          # x
                        + Din_p * H_p * in_item        # W1
                        + H_p * Dout_p * in_item       # W2
                        + (H_p + Dout_p) * 4           # biases (f32)
                        + B_p * Dout_p * out_item),    # out
    )

    # Explicit VMEM budget: double-buffered x/out tiles + (default 2-buffer)
    # resident weights/biases + f32 intermediates, with 2x headroom.  Set
    # explicitly so the same tile plan works on v5e's 16 MiB default scoped
    # budget and v7x's 64 MiB physical VMEM.
    vmem_need = (2 * tile_b * (Din_p * in_item + Dout_p * out_item)
                 + 2 * (Din_p * H_p + H_p * Dout_p) * in_item
                 + 2 * (H_p + Dout_p) * 4
                 + 2 * tile_b * (H_p + Dout_p) * 4)
    vmem_limit = int(min(48 << 20, max(4 << 20, 2 * vmem_need)))
    # TODO(synk): add a K-tiled "arbitrary" grid axis for W1/W2 once realistic
    # RNN hidden sizes push the resident weights past ~8-12 MiB (v7x has only
    # 64 MiB of physical VMEM, half of v5e/v6e).

    out_p = pl.pallas_call(
        sequential_kernel,
        out_shape=jax.ShapeDtypeStruct((B_p, Dout_p), out_dtype),
        grid_spec=pltpu.PrefetchScalarGridSpec(
            num_scalar_prefetch=0,
            grid=(grid_b,),
            in_specs=[
                pl.BlockSpec((tile_b, Din_p), lambda i: (i, 0)),   # x tile
                pl.BlockSpec((Din_p, H_p), lambda i: (0, 0)),      # W1 (resident)
                pl.BlockSpec((1, H_p), lambda i: (0, 0)),          # b1 (resident)
                pl.BlockSpec((H_p, Dout_p), lambda i: (0, 0)),     # W2 (resident)
                pl.BlockSpec((1, Dout_p), lambda i: (0, 0)),       # b2 (resident)
            ],
            out_specs=pl.BlockSpec((tile_b, Dout_p), lambda i: (i, 0)),
        ),
        compiler_params=pltpu.CompilerParams(
            dimension_semantics=("parallel",),
            vmem_limit_bytes=vmem_limit),
        cost_estimate=cost,
    )(x_p, w1_p, b1_p, w2_p, b2_p)

    # Strip lane/sublane padding outside the kernel (no-op when aligned).
    if B_p == B and Dout_p == Dout:
        return out_p
    return out_p[:B, :Dout]


def reference_forward(x, w1, b1, w2, b2):
    h = jnp.tanh(x @ w1 + b1)
    return jnp.tanh(h @ w2 + b2)


if __name__ == "__main__":
    # RNN-style usage: the Sequential MLP is applied at every timestep, so we
    # flatten (seq, batch) -> rows.  This amortizes the resident-weight DMA
    # over all timesteps and gives the kernel a multi-step grid to pipeline.
    SEQ, BATCH, Din, H, Dout = 32, 8, 32, 64, 32
    ROWS = SEQ * BATCH  # 256 rows -> tile_b=32 -> grid=(8,), even for v7x

    key = jax.random.PRNGKey(0)
    kx, kw1, kb1, kw2, kb2 = jax.random.split(key, 5)

    x = jax.random.normal(kx, (ROWS, Din), dtype=jnp.float32)
    # PyTorch-nn.Linear-style uniform init, deterministic via PRNGKey(0).
    bound1 = 1.0 / (Din ** 0.5)
    bound2 = 1.0 / (H ** 0.5)
    w1 = jax.random.uniform(kw1, (Din, H), jnp.float32, -bound1, bound1)
    b1 = jax.random.uniform(kb1, (1, H), jnp.float32, -bound1, bound1)
    w2 = jax.random.uniform(kw2, (H, Dout), jnp.float32, -bound2, bound2)
    b2 = jax.random.uniform(kb2, (1, Dout), jnp.float32, -bound2, bound2)

    ref = reference_forward(x, w1, b1, w2, b2)

    # Default path: bf16 MXU operands on every generation, f32 accumulate and
    # f32 bias/tanh.  Tolerance reflects bf16 operand quantization.
    params_bf16 = prepare_params(w1, b1, w2, b2)          # bf16 by default
    out = jax.block_until_ready(sequential_forward(x, params_bf16))
    assert out.shape == (ROWS, Dout)
    assert jnp.allclose(out, ref, atol=3e-2, rtol=3e-2)

    # f32-operand path: strict numerical parity with the PyTorch module.
    params_f32 = prepare_params(w1, b1, w2, b2, mxu_dtype=jnp.float32)
    out_f32 = jax.block_until_ready(sequential_forward(x, params_f32))
    assert out_f32.shape == (ROWS, Dout)
    assert jnp.allclose(out_f32, ref, atol=1e-5, rtol=1e-5)

    print("KERNEL_OK")
</pallas_src>

<mosaic_0001>
module attributes {stable_mosaic.version = 11 : i64} {
  func.func @sequential_kernel(%arg0: i32, %arg1: memref<32x128xbf16, #tpu.memory_space<vmem>>, %arg2: memref<128x128xbf16, #tpu.memory_space<vmem>>, %arg3: memref<1x128xf32, #tpu.memory_space<vmem>>, %arg4: memref<128x128xbf16, #tpu.memory_space<vmem>>, %arg5: memref<1x128xf32, #tpu.memory_space<vmem>>, %arg6: memref<32x128xf32, #tpu.memory_space<vmem>>) attributes {dimension_semantics = [#tpu.dimension_semantics<parallel>], iteration_bounds = array<i64: 8>, scalar_prefetch = 0 : i64, scratch_operands = 0 : i64, tpu.core_type = #tpu.core_type<tc>, window_params = [{transform_indices = @transform_0, window_bounds = array<i64: 32, 128>}, {pipeline_mode = #tpu.pipeline_mode<synchronous>, transform_indices = @transform_1, window_bounds = array<i64: 128, 128>}, {pipeline_mode = #tpu.pipeline_mode<synchronous>, transform_indices = @transform_2, window_bounds = array<i64: 1, 128>}, {pipeline_mode = #tpu.pipeline_mode<synchronous>, transform_indices = @transform_3, window_bounds = array<i64: 128, 128>}, {pipeline_mode = #tpu.pipeline_mode<synchronous>, transform_indices = @transform_4, window_bounds = array<i64: 1, 128>}, {transform_indices = @transform_5, window_bounds = array<i64: 32, 128>}]} {
    %c0 = arith.constant 0 : index
    %c0_0 = arith.constant 0 : index
    %0 = vector.load %arg1[%c0, %c0_0] : memref<32x128xbf16, #tpu.memory_space<vmem>>, vector<32x128xbf16>
    %c0_1 = arith.constant 0 : index
    %c0_2 = arith.constant 0 : index
    %1 = vector.load %arg2[%c0_1, %c0_2] : memref<128x128xbf16, #tpu.memory_space<vmem>>, vector<128x128xbf16>
    %cst = arith.constant dense<0.000000e+00> : vector<32x128xf32>
    %2 = tpu.matmul %0, %1, %cst {dimension_numbers = #tpu.dot_dimension_numbers<[1], [0], [0], [1], [0, 0, 1, 1], [], []>} : vector<32x128xbf16>, vector<128x128xbf16>, vector<32x128xf32> -> vector<32x128xf32>
    %c0_3 = arith.constant 0 : index
    %c0_4 = arith.constant 0 : index
    %3 = vector.load %arg3[%c0_3, %c0_4] : memref<1x128xf32, #tpu.memory_space<vmem>>, vector<1x128xf32>
    %4 = vector.broadcast %3 : vector<1x128xf32> to vector<32x128xf32>
    %5 = arith.addf %2, %4 : vector<32x128xf32>
    %6 = math.tanh %5 : vector<32x128xf32>
    %7 = arith.truncf %6 : vector<32x128xf32> to vector<32x128xbf16>
    %c0_5 = arith.constant 0 : index
    %c0_6 = arith.constant 0 : index
    %8 = vector.load %arg4[%c0_5, %c0_6] : memref<128x128xbf16, #tpu.memory_space<vmem>>, vector<128x128xbf16>
    %cst_7 = arith.constant dense<0.000000e+00> : vector<32x128xf32>
    %9 = tpu.matmul %7, %8, %cst_7 {dimension_numbers = #tpu.dot_dimension_numbers<[1], [0], [0], [1], [0, 0, 1, 1], [], []>} : vector<32x128xbf16>, vector<128x128xbf16>, vector<32x128xf32> -> vector<32x128xf32>
    %c0_8 = arith.constant 0 : index
    %c0_9 = arith.constant 0 : index
    %10 = vector.load %arg5[%c0_8, %c0_9] : memref<1x128xf32, #tpu.memory_space<vmem>>, vector<1x128xf32>
    %11 = vector.broadcast %10 : vector<1x128xf32> to vector<32x128xf32>
    %12 = arith.addf %9, %11 : vector<32x128xf32>
    %13 = math.tanh %12 : vector<32x128xf32>
    %c0_10 = arith.constant 0 : index
    %c0_11 = arith.constant 0 : index
    %14 = vector.load %arg6[%c0_10, %c0_11] : memref<32x128xf32, #tpu.memory_space<vmem>>, vector<32x128xf32>
    tpu.vector_store %arg6[%c0_10, %c0_11], %13 {strides = array<i32>} : memref<32x128xf32, #tpu.memory_space<vmem>>, vector<32x128xf32>,
    return
  }
  func.func @transform_0(%arg0: i32) -> (i32, i32) {
    %c0_i32 = arith.constant 0 : i32
    %c0_i32_0 = arith.constant 0 : i32
    return %arg0, %c0_i32 : i32, i32
  }
  func.func @transform_1(%arg0: i32) -> (i32, i32) {
    %c0_i32 = arith.constant 0 : i32
    %c0_i32_0 = arith.constant 0 : i32
    %c0_i32_1 = arith.constant 0 : i32
    return %c0_i32, %c0_i32_0 : i32, i32
  }
  func.func @transform_2(%arg0: i32) -> (i32, i32) {
    %c0_i32 = arith.constant 0 : i32
    %c0_i32_0 = arith.constant 0 : i32
    %c0_i32_1 = arith.constant 0 : i32
    return %c0_i32, %c0_i32_0 : i32, i32
  }
  func.func @transform_3(%arg0: i32) -> (i32, i32) {
    %c0_i32 = arith.constant 0 : i32
    %c0_i32_0 = arith.constant 0 : i32
    %c0_i32_1 = arith.constant 0 : i32
    return %c0_i32, %c0_i32_0 : i32, i32
  }
  func.func @transform_4(%arg0: i32) -> (i32, i32) {
    %c0_i32 = arith.constant 0 : i32
    %c0_i32_0 = arith.constant 0 : i32
    %c0_i32_1 = arith.constant 0 : i32
    return %c0_i32, %c0_i32_0 : i32, i32
  }
  func.func @transform_5(%arg0: i32) -> (i32, i32) {
    %c0_i32 = arith.constant 0 : i32
    %c0_i32_0 = arith.constant 0 : i32
    return %arg0, %c0_i32 : i32, i32
  }
}

</mosaic_0001>

<bundles_post_ra>
// kernel: tpu_custom_call.1
= control target key start
LH: loop header
LB: loop body
LE: loop exit
PB: predicated region body
PF: predicated region fallthrough
CT: control target
= control target key end

     0   :  { %10 = vsyncpa [#allocation3], 0  ;;  %s1297_s0 = inlined_call_operand.hbm [shape: bf16[256,128], index: 0, kind: input, shape index: {}]   ;;  %s1298_s1 = inlined_call_operand.hbm [shape: bf16[128,128], index: 1, kind: input, shape index: {}]   ;;  %s1299_s2 = inlined_call_operand.vmem [shape: f32[1,128], index: 2, kind: input, shape index: {}]   ;;  %s1300_s3 = inlined_call_operand.hbm [shape: bf16[128,128], index: 3, kind: input, shape index: {}]   ;;  %s1301_s4 = inlined_call_operand.vmem [shape: f32[1,128], index: 4, kind: input, shape index: {}]   ;;  %s1302_s5 = inlined_call_operand.hbm [shape: f32[256,128], index: 5, kind: output, shape index: {}]  }
   0x1   :  { %12 = vsyncpa [#allocation3 + $0x1], 0 }
   0x2   :  { %13 = vsyncpa [#allocation6], 0 }
   0x3   :  { %14 = vsyncpa [#allocation4], 0 }
   0x4   :  { %16 = vsyncpa [#allocation4 + $0x1], 0  ;;  %s1052_s18 = smov 0   ;;  %s1054_s19 = smov 0  }
   0x5   :  { %s1056_s20 = smov 0   ;;  %s1058_s21 = smov 0  }
   0x6 LB: > { %s1073_s22 = sadd.s32 4294967295, %s1012_s21   ;;  %s651_s23 = sadd.s32 4294967294, %s1012_s21   ;;  %s1012_s21 = sphi %s1058_s21, %s1321_s21   ;;  %s1008_s20 = sphi %s1056_s20, %s1320_s20   ;;  %s1004_s19 = sphi %s1054_s19, %s1319_s19   ;;  %s1000_s18 = sphi %s1052_s18, %s1318_s18  }
   0x7   : > { %p42_p0 = scmp.ne.s32.totalorder %s1004_s19, %s1000_s18  ;;  %p1303_p1 = scmp.eq.s32.totalorder %s1073_s22, 0 }
   0x8   : > { %p156_p3 = scmp.eq.s32.totalorder %s651_s23, 7  ;;  %p652_p5 = scmp.ge.s32.totalorder %s1012_s21, 1 }
   0x9   : > { %p1082_p4 = por %p1303_p1, %p42_p0  ;;  %p163_p7 = scmp.lt.s32.totalorder %s1012_s21, 9 }
   0xa   : > { %p1087_p6 = por %p156_p3, %p42_p0  ;;  %s1014_s27 = smov [#allocation5]  }
   0xb   : > { %s1306_s24 = scalar_select %p1082_p4, 1, 0 }
   0xc   : > { %s1307_s25 = scalar_select %p1087_p6, 1, 0 }
   0xd   : > { %p1092_p8 = pnand %p652_p5, %p163_p7  ;;  %s175_s28 = sshll.u32 %s1014_s27, 4  ;;  %s176_s28 = int_to_ptr.vmem [resolvable:$true] %s175_s28 }
   0xe   : > { %s1015_s30 = smov [#allocation7]   ;;  %s856_s9 = scalar_lea.hbm %s1298_s1, 1024 }
   0xf   : > { %s1308_s26 = scalar_select %p1092_p8, 1, 0 }
  0x10   : > { %p763_p9 = pneg %p1092_p8  ;;  %s191_s6 = sshll.u32 %s1015_s30, 4  ;;  %s1104_s6 = int_to_ptr.vmem [resolvable:$true] %s191_s6 }
  0x11   : > { %p857_p11 = scmp.ne.s32.totalorder %s1298_s1, %s856_s9  ;;  %p863_p3 = scmp.lt.u32.totalorder %s856_s9, %s1298_s1 }
  0x12   : > { %p1100_p10 = pnand %p763_p9, %p1303_p1 }
  0x14   : > { %p858_p12 = pneg %p1100_p10 }
  0x16   : > { %p859_p13 = pnand %p858_p12, %p857_p11 }
  0x18   : > { %p860_p0 = pneg %p859_p13 }
  0x1a   : > { %p865_p5 = pnand %p863_p3, %p860_p0 }
  0x1c   : > { %868 = shalt.err (!%p865_p5)
}
  0x1d   : > { %s869_s14 = scalar_lea.vmem %s176_s28, 1024  ;;  %p877_p2 = scmp.lt.s32.totalorder %s176_s28, %s176_s28 }
  0x1e   : > { %p870_p7 = scmp.ne.s32.totalorder %s176_s28, %s869_s14  ;;  %p878_p6 = scmp.lt.s32.totalorder %s869_s14, %s869_s14 }
  0x20   : > { %p872_p9 = pnand %p870_p7, %p858_p12  ;;  %p879_p4 = por %p878_p6, %p877_p2 }
  0x22   : > { %p873_p1 = pneg %p872_p9 }
  0x24   : > { %p880_p8 = pnand %p879_p4, %p873_p1 }
  0x26   : > { %883 = shalt.err (!%p880_p8)
}
  0x27   : > { %s1016_s15 = smov 64   ;;  %s1017_s16 = smov 4  }
  0x28   : > { %766 = dma.hbm_to_vmem [thread:$0]  (!%p1100_p10), %s1298_s1, 1024, %s176_s28, [#allocation6], %s1016_s15, %s1016_s15, %s1017_s16  }
  0x29   : > { %s884_s7 = scalar_lea.hbm %s1300_s3, 1024 }
  0x2a   : > { %p885_p1 = scmp.ne.s32.totalorder %s1300_s3, %s884_s7  ;;  %p891_p6 = scmp.lt.u32.totalorder %s884_s7, %s1300_s3 }
  0x2c   : > { %p887_p2 = pnand %p885_p1, %p858_p12 }
  0x2e   : > { %p888_p4 = pneg %p887_p2 }
  0x30   : > { %p893_p8 = pnand %p891_p6, %p888_p4 }
  0x32   : > { %896 = shalt.err (!%p893_p8)
}
  0x33   : > { %s897_s28 = scalar_lea.vmem %s1104_s6, 1024  ;;  %p905_p3 = scmp.lt.s32.totalorder %s1104_s6, %s1104_s6 }
  0x34   : > { %p898_p11 = scmp.ne.s32.totalorder %s1104_s6, %s897_s28  ;;  %p906_p5 = scmp.lt.s32.totalorder %s897_s28, %s897_s28 }
  0x36   : > { %p900_p13 = pnand %p898_p11, %p858_p12  ;;  %p907_p7 = por %p906_p5, %p905_p3 }
  0x38   : > { %p901_p0 = pneg %p900_p13 }
  0x3a   : > { %p908_p9 = pnand %p907_p7, %p901_p0 }
  0x3c   : > { %911 = shalt.err (!%p908_p9)
}
  0x3d   : > { %769 = dma.hbm_to_vmem [thread:$0]  (!%p1100_p10), %s1300_s3, 1024, %s1104_s6, [#allocation6], %s1016_s15, %s1016_s15, %s1017_s16  }
  0x3e   : > { %s1160_s29 = sadd.s32 1, %s1012_s21   ;;  %s29_s14 = sadd.s32 1, %s1008_s20 }
  0x3f   : > { %s26_s17 = ssub.s32 %s1012_s21, %s1160_s29  ;;  %p36_p12 = scmp.ne.s32.totalorder %s1008_s20, %s1004_s19 }
  0x40   : > { %p27_p1 = scmp.eq.s32.totalorder %s26_s17, 0  ;;  %p37_p2 = scmp.eq.s32.totalorder %s1012_s21, 0 }
  0x41   : > { %p1310_p4 = scmp.eq.s32.totalorder %s1073_s22, 7  ;;  %p780_p8 = scmp.lt.s32.totalorder %s1012_s21, 8 }
  0x42   : > { %s1176_s27 = scalar_select %p27_p1, %s1008_s20, %s29_s14  }
  0x43   : > { %p1170_p6 = por %p1310_p4, %p36_p12  ;;  %p38_p11 = por %p37_p2, %p36_p12 }
  0x44   : > { %s208_s30 = sand.u32 1, %s1008_s20   ;;  %s689_s6 = sshll.u32 %s1012_s21, 8 }
  0x45   : > { %s656_s7 = sshll.u32 %s208_s30, 4  ;;  %s1183_s10 = scalar_lea.hbm %s1297_s0, %s689_s6 }
  0x46   : > { %s212_s11 = scalar_lea.vmem [#allocation2], %s656_s7  ;;  %p1187_p10 = pnand %p780_p8, %p38_p11 }
  0x47   : > { %s219_s28 = sshll.u32 %s212_s11, 4  ;;  %s1191_s13 = scalar_lea.sflag [#allocation3], %s208_s30  ;;  %s1185_s28 = int_to_ptr.vmem [resolvable:$true] %s219_s28 }
  0x48   : > { %s912_s14 = scalar_lea.hbm %s1183_s10, 256  ;;  %p914_p0 = pneg %p1187_p10 }
  0x49   : > { %p913_p13 = scmp.ne.s32.totalorder %s1183_s10, %s912_s14  ;;  %s917_s6 = scalar_lea.hbm %s1297_s0, 2048 }
  0x4a   : > { %p918_p7 = scmp.lt.u32.totalorder %s1183_s10, %s1297_s0  ;;  %p919_p9 = scmp.lt.u32.totalorder %s917_s6, %s912_s14 }
  0x4b   : > { %p915_p3 = pnand %p914_p0, %p913_p13  ;;  %p921_p1 = scmp.lt.u32.totalorder %s912_s14, %s1183_s10 }
  0x4c   : > { %p920_p12 = por %p919_p9, %p918_p7 }
  0x4d   : > { %p916_p5 = pneg %p915_p3 }
  0x4e   : > { %p922_p2 = por %p921_p1, %p920_p12 }
  0x50   : > { %p923_p4 = pnand %p922_p2, %p916_p5 }
  0x52   : > { %926 = shalt.err (!%p923_p4)
}
  0x53   : > { %s927_s30 = scalar_lea.vmem %s1185_s28, 256  ;;  %s1018_s11 = smov [#allocation2]  }
  0x54   : > { %p928_p8 = scmp.ne.s32.totalorder %s1185_s28, %s927_s30  ;;  %s932_s17 = sshll.u32 %s1018_s11, 4  ;;  %s933_s17 = int_to_ptr.vmem [resolvable:$false] %s932_s17 }
  0x55   : > { %s934_s7 = scalar_lea.vmem %s933_s17, 512  ;;  %p935_p3 = scmp.lt.s32.totalorder %s1185_s28, %s933_s17 }
  0x56   : > { %p930_p11 = pnand %p928_p8, %p914_p0  ;;  %p936_p7 = scmp.lt.s32.totalorder %s934_s7, %s927_s30 }
  0x58   : > { %p931_p13 = pneg %p930_p11  ;;  %p937_p9 = por %p936_p7, %p935_p3 }
  0x5a   : > { %p938_p12 = pnand %p937_p9, %p931_p13 }
  0x5c   : > { %941 = shalt.err (!%p938_p12)
}
  0x5d   : > { %773 = dma.hbm_to_vmem [thread:$0]  (!%p1187_p10), %s1183_s10, 256, %s1185_s28, %s1191_s13, %s1016_s15, %s1016_s15, %s1017_s16  }
  0x5e   : > { %p1313_p0 = scmp.ne.s32.totalorder %s1308_s26, 0 }
  0x5f   : > { %s1225_s14 = sand.u32 (!%p1313_p0), 1, %s1004_s19   ;;  %p1314_p5 = scmp.ne.s32.totalorder (!%p1313_p0), %s1306_s24, 0 }
  0x60   : > { %231 = sbr.rel (%p1313_p0) target bundleno = 614 (0x266), region = 40  ;;  %s660_s6 = sshll.u32 (!%p1313_p0), %s1225_s14, 4 }
  0x61   : > { %s234_s8 = scalar_lea.sflag (!%p1313_p0), [#allocation3], %s1225_s14  ;;  %s1229_s9 = scalar_lea.vmem (!%p1313_p0), [#allocation2], %s660_s6 }
  0x67   : > { %987 = dma.done.wait (%p1314_p5), %s234_s8, 256  }
  0x68   : > { %989 = vsyncadd (%p1314_p5), %s234_s8, 4294967040  ;;  %p1315_p10 = scmp.eq.s32.totalorder %s1073_s22, 0 }
  0x6a   : > { %991 = dma.done.wait (%p1315_p10), [#allocation6], 2048   ;;  %p1316_p1 = pmov %p1315_p10 }
  0x6b   : > { %v822_v0 = vld [vmem:[#allocation5] sm:$0xff]   ;;  %v823_v1 = vld [vmem:[#allocation5 + $0x8] sm:$0xff]   ;;  %v824_v2 = vld [vmem:[#allocation5 + $0x10] sm:$0xff]   ;;  %s663_s10 = sshll.u32 %s1225_s14, 5  ;;  %s690_s28 = sshll.u32 %s1073_s22, 9 }
  0x6c   : > { %993 = vsyncadd (%p1316_p1), [#allocation6], 4294965248  ;;  %711 = vmatprep.subr.bf16.mxu0 %v822_v0  ;;  %v825_v3 = vld [vmem:[#allocation5 + $0x18] sm:$0xff]   ;;  %v830_v4 = vld [vmem:[%s1229_s9] sm:$0xff]   ;;  %s271_s12 = scalar_lea.vmem [#allocation8], %s663_s10  ;;  %s1252_s17 = scalar_lea.hbm %s1302_s5, %s690_s28 }
  0x6d   : > { %712 = vmatpush3.bf16.msra.mxu0 %v822_v0  ;;  %v826_v5 = vld [vmem:[#allocation5 + $0x20] sm:$0xff]   ;;  %727 = vmatprep.mubr.bf16.mxu0 %v830_v4  ;;  %v833_v7 = vld [vmem:[#allocation7 + $0x8] sm:$0xff]   ;;  %v834_v8 = vld [vmem:[#allocation7 + $0x10] sm:$0xff]   ;;  %s559_s13 = sshll.u32 %s271_s12, 4  ;;  %s546_s22 = scalar_lea.sflag [#allocation4], %s1225_s14  ;;  %s1254_s13 = int_to_ptr.vmem [resolvable:$true] %s559_s13 }
  0x6e   : > { %713 = vmatprep.subr.bf16.mxu0 %v823_v1  ;;  %v832_v6 = vld [vmem:[#allocation7] sm:$0xff]   ;;  %v827_v9 = vld [vmem:[#allocation5 + $0x28] sm:$0xff]   ;;  %v828_v10 = vld [vmem:[#allocation5 + $0x30] sm:$0xff]   ;;  %s942_s7 = scalar_lea.vmem %s1254_s13, 512  ;;  %s1019_s6 = smov [#allocation8]  }
  0x6f   : > { %731 = vmatprep.subr.bf16.mxu1 %v832_v6  ;;  %v829_v11 = vld [vmem:[#allocation5 + $0x38] sm:$0xff]   ;;  %v836_v14 = vld [vmem:[#allocation7 + $0x20] sm:$0xff]   ;;  %v837_v15 = vld [vmem:[#allocation7 + $0x28] sm:$0xff]   ;;  %p943_p2 = scmp.ne.s32.totalorder %s1254_s13, %s942_s7  ;;  %s946_s8 = sshll.u32 %s1019_s6, 4  ;;  %s947_s8 = int_to_ptr.vmem [resolvable:$false] %s946_s8 }
  0x70   : > { %732 = vmatpush3.bf16.msra.mxu1 %v832_v6  ;;  %v831_v12 = vld [vmem:[%s1229_s9 + $0x8] sm:$0xff]   ;;  %v838_v16 = vld [vmem:[#allocation7 + $0x30] sm:$0xff]   ;;  %v664_v18 = vld [vmem:[%s1299_s2] ss:$0 sm:$0xff]  ;;  %s948_s9 = scalar_lea.vmem %s947_s8, 1024  ;;  %p949_p11 = scmp.lt.s32.totalorder %s1254_s13, %s947_s8 }
  0x71   : > { %714 = vmatpush3.bf16.msra.mxu0 %v823_v1  ;;  %733 = vmatprep.subr.bf16.mxu1 %v833_v7  ;;  %v835_v13 = vld [vmem:[#allocation7 + $0x18] sm:$0xff]   ;;  %v675_v33 = vld [vmem:[%s1301_s4] ss:$0 sm:$0xff]  ;;  %p944_p4 = pnand %p943_p2, %p1170_p6  ;;  %p950_p13 = scmp.lt.s32.totalorder %s948_s9, %s942_s7 }
  0x72   : > { %715 = vmatprep.subr.bf16.mxu0 %v824_v2  ;;  %v839_v17 = vld [vmem:[#allocation7 + $0x38] sm:$0xff]  }
  0x73   : > { %p945_p8 = pneg %p944_p4  ;;  %p951_p3 = por %p950_p13, %p949_p11 }
  0x74   : > { %734 = vmatpush3.bf16.msra.mxu1 %v833_v7 }
  0x75   : > { %716 = vmatpush3.bf16.msra.mxu0 %v824_v2  ;;  %735 = vmatprep.subr.bf16.mxu1 %v834_v8  ;;  %p952_p7 = pnand %p951_p3, %p945_p8 }
  0x76   : > { %717 = vmatprep.subr.bf16.mxu0 %v825_v3 }
  0x78   : > { %736 = vmatpush3.bf16.msra.mxu1 %v834_v8 }
  0x79   : > { %718 = vmatpush3.bf16.msra.mxu0 %v825_v3  ;;  %737 = vmatprep.subr.bf16.mxu1 %v835_v13 }
  0x7a   : > { %719 = vmatprep.subr.bf16.mxu0 %v826_v5 }
  0x7c   : > { %738 = vmatpush3.bf16.msra.mxu1 %v835_v13 }
  0x7d   : > { %720 = vmatpush3.bf16.msra.mxu0 %v826_v5  ;;  %739 = vmatprep.subr.bf16.mxu1 %v836_v14 }
  0x7e   : > { %721 = vmatprep.subr.bf16.mxu0 %v827_v9 }
  0x80   : > { %740 = vmatpush3.bf16.msra.mxu1 %v836_v14 }
  0x81   : > { %722 = vmatpush3.bf16.msra.mxu0 %v827_v9  ;;  %741 = vmatprep.subr.bf16.mxu1 %v837_v15 }
  0x82   : > { %723 = vmatprep.subr.bf16.mxu0 %v828_v10 }
  0x84   : > { %742 = vmatpush3.bf16.msra.mxu1 %v837_v15 }
  0x85   : > { %724 = vmatpush3.bf16.msra.mxu0 %v828_v10  ;;  %743 = vmatprep.subr.bf16.mxu1 %v838_v16 }
  0x86   : > { %725 = vmatprep.subr.bf16.mxu0 %v829_v11 }
  0x88   : > { %744 = vmatpush3.bf16.msra.mxu1 %v838_v16 }
  0x89   : > { %726 = vmatpush3.bf16.msra.mxu0 %v829_v11  ;;  %745 = vmatprep.subr.bf16.mxu1 %v839_v17 }
  0x8c   : > { %728 = vmatmul.mubr.bf16.vlgmr.msra.gmra.mrb[0].mxu0 %v831_v12  ;;  %746 = vmatpush3.bf16.msra.mxu1 %v839_v17 }
 0x15f   : > { %v729_v19 = vpop.f32.mrb[0].mxu0 }
 0x160   : > { %v405_v20 = vadd.f32 %v729_v19, %v664_v18  ;;  %v396_v21 = vpop.f32.mrb[1].mxu0 }
 0x161   : > { %v397_v22 = vadd.f32 %v664_v18, %v396_v21  ;;  %v730_v23 = vpop.f32.mrb[2].mxu0 }
 0x162   : > { %840 = vtanh.f32 %v405_v20  ;;  %v408_v24 = vadd.f32 %v730_v23, %v664_v18  ;;  %v399_v25 = vpop.f32.mrb[3].mxu0 }
 0x163   : > { %842 = vtanh.f32 %v397_v22  ;;  %v400_v26 = vadd.f32 %v664_v18, %v399_v25 }
 0x164   : > { %844 = vtanh.f32 %v408_v24 }
 0x165   : > { %846 = vtanh.f32 %v400_v26 }
 0x16c   : > { %v841_v27 = vpop.eup %840 }
 0x16d   : > { %v843_v28 = vpop.eup %842 }
 0x16e   : > { %v845_v29 = vpop.eup %844 }
 0x16f   : > { %v847_v30 = vpop.eup %846  ;;  %v416_v31 = vpack.c.bf16 %v845_v29, %v841_v27 }
 0x170   : > { %v415_v32 = vpack.c.bf16 %v847_v30, %v843_v28 }
 0x172   : > { %747 = vmatprep.mubr.bf16.mxu1 %v415_v32 }
 0x173   : > { %748 = vmatmul.mubr.bf16.vlgmr.msra.gmra.mrb[0].mxu1 %v416_v31 }
 0x246   : > { %v749_v34 = vpop.f32.mrb[0].mxu1 }
 0x247   : > { %v531_v35 = vadd.f32 %v749_v34, %v675_v33  ;;  %v522_v36 = vpop.f32.mrb[1].mxu1 }
 0x248   : > { %v523_v37 = vadd.f32 %v675_v33, %v522_v36  ;;  %v750_v38 = vpop.f32.mrb[2].mxu1 }
 0x249   : > { %848 = vtanh.f32 %v531_v35  ;;  %v534_v39 = vadd.f32 %v750_v38, %v675_v33  ;;  %v525_v40 = vpop.f32.mrb[3].mxu1 }
 0x24a   : > { %850 = vtanh.f32 %v523_v37  ;;  %v526_v41 = vadd.f32 %v675_v33, %v525_v40 }
 0x24b   : > { %852 = vtanh.f32 %v534_v39 }
 0x24c   : > { %854 = vtanh.f32 %v526_v41 }
 0x253   : > { %v849_v42 = vpop.eup %848 }
 0x254   : > { %v851_v43 = vpop.eup %850  ;;  %543 = vst [vmem:[%s271_s12 + $0x10] sm:$0xff] %v849_v42 }
 0x255   : > { %v853_v44 = vpop.eup %852  ;;  %541 = vst [vmem:[%s271_s12] sm:$0xff] %v851_v43 }
 0x256   : > { %v855_v45 = vpop.eup %854  ;;  %544 = vst [vmem:[%s271_s12 + $0x18] sm:$0xff] %v853_v44 }
 0x257   : > { %542 = vst [vmem:[%s271_s12 + $0x8] sm:$0xff] %v855_v45 }
 0x258   : > { %955 = shalt.err (!%p952_p7)
}
 0x259   : > { %s956_s24 = scalar_lea.hbm %s1252_s17, 512  ;;  %s960_s16 = scalar_lea.hbm %s1302_s5, 4096 }
 0x25a   : > { %p957_p9 = scmp.ne.s32.totalorder %s1252_s17, %s956_s24  ;;  %p961_p5 = scmp.lt.u32.totalorder %s1252_s17, %s1302_s5 }
 0x25b   : > { %p962_p10 = scmp.lt.u32.totalorder %s960_s16, %s956_s24  ;;  %p964_p2 = scmp.lt.u32.totalorder %s956_s24, %s1252_s17 }
 0x25c   : > { %p958_p12 = pnand %p957_p9, %p1170_p6 }
 0x25d   : > { %p963_p1 = por %p962_p10, %p961_p5 }
 0x25e   : > { %p959_p0 = pneg %p958_p12 }
 0x25f   : > { %p965_p4 = por %p964_p2, %p963_p1 }
 0x261   : > { %p966_p8 = pnand %p965_p4, %p959_p0 }
 0x263   : > { %969 = shalt.err (!%p966_p8)
}
 0x264   : > { %s1020_s12 = smov 128   ;;  %s1021_s30 = smov 8  }
 0x265   : > { %761 = dma.vmem_to_hbm [thread:$0]  (%p1170_p6), %s1254_s13, 512, %s1252_s17, %s546_s22, %s1020_s12, %s1020_s12, %s1021_s30  }
 0x266 PF: > { %p783_p11 = scmp.ge.s32.totalorder %s1012_s21, 2  ;;  %s574_s11 = sand.u32 1, %s1000_s18  }
 0x267   : > { %p1317_p13 = scmp.ne.s32.totalorder %s1307_s25, 0  ;;  %s575_s7 = scalar_lea.sflag [#allocation4], %s574_s11 }
 0x269   : > { %p775_p3 = pnand %p783_p11, %p1317_p13 }
 0x26b   : > { %995 = dma.done.wait (!%p775_p3), %s575_s7, 512  }
 0x26c   : > { %997 = vsyncadd (!%p775_p3), %s575_s7, 4294966784  ;;  %p19_p7 = scmp.ge.s32.totalorder %s1160_s29, 10   ;;  %s1318_s18 = smov %s1004_s19 }
 0x26d   : > { %s1319_s19 = smov %s1008_s20  ;;  %s1320_s20 = smov %s1176_s27 }
 0x26e   : > { %s1321_s21 = smov %s1160_s29  ;;  %21 = sbr.rel (!%p19_p7) target bundleno = 6 (0x6), region = 93 }
 0x275   :  { %580 = vsyncpa [#allocation3], 1 }
 0x276   :  { %582 = vsyncpa [#allocation3 + $0x1], 1 }
 0x277   :  { %583 = vsyncpa [#allocation6], 1 }
 0x278   :  { %584 = vsyncpa [#allocation4], 1 }
 0x279   :  { %586 = vsyncpa [#allocation4 + $0x1], 1 }

</bundles_post_ra>
